<compile_context>
chip_gen: v7x
topology: tpu7x:2x2x1
jax: 0.10.0
libtpu: 0.0.40
codegen_flags: <defaults>
</compile_context>

<pallas_src>
import jax
import jax.numpy as jnp
from jax.experimental import pallas as pl
from jax.experimental.pallas import tpu as pltpu


_TARGET_TILE_BYTES = 2 * 1024 * 1024  # ~2 MiB blocks: ~85%+ of HBM roofline for a
                                      # mem-bound elementwise op, while 2(bufs) x 2(in+out)
                                      # x 2 MiB fits every generation's scoped VMEM.


# ----------------------------------------------------------------------------
# Backward kernel: grad_input = -lambda * grad_output
# ----------------------------------------------------------------------------
def _grl_bwd_kernel(lam_ref, g_ref, o_ref):
    # lam_ref: SMEM (1,) f32 scalar; g_ref/o_ref: VMEM (TILE_R, LANE) tiles.
    scale = (-lam_ref[0]).astype(o_ref.dtype)
    o_ref[...] = g_ref[...] * scale  # one VPU multiply per element; DMA-bound.


def _flatten_lane_dense(a):
    """Flatten to a 2-D view whose last (lane) dim is a large multiple of 128."""
    n = a.size
    for lane in (2048, 1024, 512, 256, 128):
        if n % lane == 0:
            return a.reshape(n // lane, lane)
    # Guard: element count not divisible by 128 -> natural trailing dim.
    if a.ndim >= 2:
        return a.reshape(-1, a.shape[-1])
    return a.reshape(1, max(n, 1))


def _pick_tile_rows(rows, lane, itemsize):
    """~2 MiB row tiles, multiple of 8 sublanes, preferring exact divisors of rows."""
    target = max(8, (_TARGET_TILE_BYTES // (lane * itemsize)) // 8 * 8)
    if target >= rows:
        return rows
    # Prefer a tile that divides rows exactly (no masked partial blocks),
    # scanning down from the bandwidth-optimal size in sublane (8) steps.
    t = target
    while t >= 8:
        if rows % t == 0:
            return t
        t -= 8
    return target  # fall back: partial last block handled by Pallas masking.


def _neg_scale_pallas(g, lambda_val):
    """Compute -lambda * g with a tiled, pipelined Pallas kernel."""
    orig_shape = g.shape
    g2d = _flatten_lane_dense(g)
    rows, lane = g2d.shape
    itemsize = jnp.dtype(g2d.dtype).itemsize

    if lane % 128 != 0:
        # Single full block: block shape == array shape waives the (8,128) rule.
        tile_r = rows
    else:
        tile_r = _pick_tile_rows(rows, lane, itemsize)
    grid = (pl.cdiv(rows, tile_r),)

    lam = jnp.asarray(lambda_val, dtype=jnp.float32).reshape((1,))

    out2d = pl.pallas_call(
        _grl_bwd_kernel,
        out_shape=jax.ShapeDtypeStruct(g2d.shape, g2d.dtype),
        grid=grid,
        in_specs=[
            pl.BlockSpec(memory_space=pltpu.MemorySpace.SMEM),    # lambda scalar
            pl.BlockSpec((tile_r, lane), lambda i: (i, 0)),        # grad_output tile
        ],
        out_specs=pl.BlockSpec((tile_r, lane), lambda i: (i, 0)),
        input_output_aliases={1: 0},  # reuse the cotangent buffer for the output
        compiler_params=pltpu.CompilerParams(
            dimension_semantics=("parallel",),      # shard rows across TCs on v7x
            vmem_limit_bytes=32 * 1024 * 1024,      # headroom; safe on v5e/v6e/v7x
        ),
    )(lam, g2d)
    return out2d.reshape(orig_shape)


# ----------------------------------------------------------------------------
# GradientReversalLayer wrapper (custom_vjp mirrors torch.autograd.Function)
# ----------------------------------------------------------------------------
def make_gradient_reversal_layer(lambda_val=1.0):
    @jax.custom_vjp
    def grl(x):
        return x  # forward is a pure identity: no kernel, no HBM traffic

    def grl_fwd(x):
        return x, None

    def grl_bwd(_, g):
        return (_neg_scale_pallas(g, lambda_val),)

    grl.defvjp(grl_fwd, grl_bwd)
    return grl


# ----------------------------------------------------------------------------
# Test
# ----------------------------------------------------------------------------
if __name__ == "__main__":
    lambda_val = 1.0
    grl = make_gradient_reversal_layer(lambda_val)

    key = jax.random.PRNGKey(0)
    x = jax.random.normal(key, (2, 4, 16, 16), dtype=jnp.float32)  # NCHW

    # Forward pass: must be exact identity.
    y = jax.block_until_ready(grl(x))
    assert y.shape == x.shape and y.dtype == x.dtype
    assert jnp.array_equal(y, x), "forward is not identity"

    # Backward pass: gradient must be -lambda * upstream gradient.
    def loss(z):
        return jnp.sum(grl(z) * 2.0)  # upstream grad = 2 everywhere

    g = jax.block_until_ready(jax.grad(loss)(x))
    expected = -lambda_val * 2.0 * jnp.ones_like(x)
    assert jnp.allclose(g, expected, atol=1e-6), "backward grad mismatch"

    # Exercise the non-128-divisible fallback path and a different lambda.
    grl2 = make_gradient_reversal_layer(0.5)
    x2 = jax.random.normal(jax.random.PRNGKey(0), (3, 5, 7), dtype=jnp.float32)

    def loss2(z):
        return jnp.sum(grl2(z) * 3.0)

    g2 = jax.block_until_ready(jax.grad(loss2)(x2))
    assert jnp.allclose(g2, -0.5 * 3.0 * jnp.ones_like(x2), atol=1e-6), \
        "backward grad mismatch (fallback path)"

    # Exercise the multi-tile grid path (lane-dense, rows > tile_r) in bf16.
    grl3 = make_gradient_reversal_layer(2.0)
    x3 = jax.random.normal(jax.random.PRNGKey(1), (8, 1024, 128), dtype=jnp.bfloat16)

    def loss3(z):
        return jnp.sum(grl3(z).astype(jnp.float32))  # upstream grad = 1 everywhere

    g3 = jax.block_until_ready(jax.grad(loss3)(x3))
    assert jnp.allclose(g3.astype(jnp.float32),
                        -2.0 * jnp.ones(x3.shape, jnp.float32), atol=1e-2), \
        "backward grad mismatch (tiled bf16 path)"

    print("KERNEL_OK")
</pallas_src>

<mosaic_0001>
module attributes {stable_mosaic.version = 11 : i64} {
  func.func @_grl_bwd_kernel(%arg0: i32, %arg1: memref<1xf32, #tpu.memory_space<smem>>, %arg2: memref<1x2048xf32, #tpu.memory_space<vmem>>, %arg3: memref<1x2048xf32, #tpu.memory_space<vmem>>) attributes {dimension_semantics = [#tpu.dimension_semantics<parallel>], iteration_bounds = array<i64: 1>, scalar_prefetch = 0 : i64, scratch_operands = 0 : i64, tpu.core_type = #tpu.core_type<tc>, window_params = [{transform_indices = @transform_0, window_bounds = array<i64: 1>}, {transform_indices = @transform_1, window_bounds = array<i64: 1, 2048>}, {transform_indices = @transform_2, window_bounds = array<i64: 1, 2048>}]} {
    %c0 = arith.constant 0 : index
    %0 = memref.load %arg1[%c0] : memref<1xf32, #tpu.memory_space<smem>>
    %cst = arith.constant 0.000000e+00 : f32
    %1 = arith.subf %cst, %0 : f32
    %c0_0 = arith.constant 0 : index
    %c0_1 = arith.constant 0 : index
    %2 = vector.load %arg2[%c0_0, %c0_1] : memref<1x2048xf32, #tpu.memory_space<vmem>>, vector<1x2048xf32>
    %3 = vector.broadcast %1 : f32 to vector<1x2048xf32>
    %4 = arith.mulf %2, %3 : vector<1x2048xf32>
    %c0_2 = arith.constant 0 : index
    %c0_3 = arith.constant 0 : index
    %5 = vector.load %arg3[%c0_2, %c0_3] : memref<1x2048xf32, #tpu.memory_space<vmem>>, vector<1x2048xf32>
    tpu.vector_store %arg3[%c0_2, %c0_3], %4 {strides = array<i32>} : memref<1x2048xf32, #tpu.memory_space<vmem>>, vector<1x2048xf32>,
    return
  }
  func.func @transform_0(%arg0: i32) -> i32 {
    %c0_i32 = arith.constant 0 : i32
    %c0_i32_0 = arith.constant 0 : i32
    return %c0_i32 : i32
  }
  func.func @transform_1(%arg0: i32) -> (i32, i32) {
    %c0_i32 = arith.constant 0 : i32
    %c0_i32_0 = arith.constant 0 : i32
    return %arg0, %c0_i32 : i32, i32
  }
  func.func @transform_2(%arg0: i32) -> (i32, i32) {
    %c0_i32 = arith.constant 0 : i32
    %c0_i32_0 = arith.constant 0 : i32
    return %arg0, %c0_i32 : i32, i32
  }
}

</mosaic_0001>

<bundles_post_ra>
// kernel: tpu_custom_call.1
= control target key start
LH: loop header
LB: loop body
LE: loop exit
PB: predicated region body
PF: predicated region fallthrough
CT: control target
= control target key end

     0   :  { %8 = vsyncpa [#allocation4], 0  ;;  %s143_s0 = inlined_call_operand.<no memory space> [shape: f32[1], index: 0, kind: input, shape index: {}]   ;;  %s144_s1 = inlined_call_operand.hbm [shape: f32[1,2048], index: 1, kind: input, shape index: {}, may-alias: {1,2}]   ;;  %s145_s2 = inlined_call_operand.hbm [shape: f32[1,2048], index: 2, kind: output, shape index: {}, may-alias: {1,2}]  }
   0x1   :  { %9 = vsyncpa [#allocation5], 0  ;;  %s99_s9 = smov [#allocation3]   ;;  %s51_s13 = scalar_lea.hbm %s144_s1, 256 }
   0x2   :  { %s18_s10 = sshll.u32 %s99_s9, 4  ;;  %p52_p0 = scmp.ne.s32.totalorder %s144_s1, %s51_s13  ;;  %s19_s10 = int_to_ptr.vmem [resolvable:$true] %s18_s10 }
   0x3   :  { %p55_p1 = scmp.lt.u32.totalorder %s51_s13, %s144_s1 }
   0x5   :  { %p57_p2 = pnand %p55_p1, %p52_p0 }
   0x7   :  { %60 = shalt.err (!%p57_p2)
}
   0x8   :  { %s61_s18 = scalar_lea.vmem %s19_s10, 256  ;;  %p66_p4 = scmp.lt.s32.totalorder %s19_s10, %s19_s10 }
   0x9   :  { %p62_p3 = scmp.ne.s32.totalorder %s19_s10, %s61_s18  ;;  %p67_p5 = scmp.lt.s32.totalorder %s61_s18, %s61_s18 }
   0xb   :  { %p68_p6 = por %p67_p5, %p66_p4 }
   0xd   :  { %p69_p7 = pnand %p68_p6, %p62_p3 }
   0xf   :  { %72 = shalt.err (!%p69_p7)
}
  0x10   :  { %21 = dma.hbm_to_vmem [thread:$0]  %s144_s1, 256, %s19_s10, [#allocation4]  }
  0x11   :  { %95 = dma.done.wait [#allocation4], 256  }
  0x12   :  { %96 = vsyncadd [#allocation4], 4294967040  ;;  %s26_s23 = ssub.f32 0.0, %s143_s0  ;;  %s100_s24 = smov [#allocation6]   ;;  %v27_v1 = vld [vmem:[#allocation3] sm:$0xff]  ;;  %v28_v2 = vld [vmem:[#allocation3 + $0x8] sm:$0xff] }
  0x13   :  { %s40_s25 = sshll.u32 %s100_s24, 4  ;;  %s41_s25 = int_to_ptr.vmem [resolvable:$true] %s40_s25 }
  0x14   :  { %v29_v0 = vstv %s26_s23  ;;  %s73_s26 = scalar_lea.vmem %s41_s25, 256  ;;  %p78_p9 = scmp.lt.s32.totalorder %s41_s25, %s41_s25 }
  0x15   :  { %v30_v3 = vmul.f32 %v29_v0, %v27_v1  ;;  %v31_v4 = vmul.f32 %v29_v0, %v28_v2  ;;  %p74_p8 = scmp.ne.s32.totalorder %s41_s25, %s73_s26  ;;  %p79_p10 = scmp.lt.s32.totalorder %s73_s26, %s73_s26 }
  0x17   :  { %32 = vst [vmem:[#allocation6] sm:$0xff] %v30_v3  ;;  %33 = vst [vmem:[#allocation6 + $0x8] sm:$0xff] %v31_v4  ;;  %p80_p11 = por %p79_p10, %p78_p9 }
  0x19   :  { %p81_p12 = pnand %p80_p11, %p74_p8 }
  0x1b   :  { %84 = shalt.err (!%p81_p12)
}
  0x1c   :  { %s85_s0 = scalar_lea.hbm %s145_s2, 256 }
  0x1d   :  { %p86_p13 = scmp.ne.s32.totalorder %s145_s2, %s85_s0  ;;  %p89_p0 = scmp.lt.u32.totalorder %s85_s0, %s145_s2 }
  0x1f   :  { %p91_p1 = pnand %p89_p0, %p86_p13 }
  0x21   :  { %94 = shalt.err (!%p91_p1)
}
  0x22   :  { %43 = dma.vmem_to_hbm [thread:$0]  %s41_s25, 256, %s145_s2, [#allocation5]  }
  0x23   :  { %97 = dma.done.wait [#allocation5], 256  }
  0x24   :  { %98 = vsyncadd [#allocation5], 4294967040 }
  0x25   :  { %47 = vsyncpa [#allocation4], 1 }
  0x26   :  { %48 = vsyncpa [#allocation5], 1 }

</bundles_post_ra>
